<compile_context>
chip_gen: v6e
topology: v6e:2x2x1
jax: 0.10.0
libtpu: 0.0.40
codegen_flags: <defaults>
</compile_context>

<pallas_src>
import functools

import jax
import jax.numpy as jnp
from jax import lax
from jax.experimental import pallas as pl
from jax.experimental.pallas import tpu as pltpu


# ----------------------------------------------------------------------------
# Kernel A: input projection for all timesteps, both directions, one matmul
# ----------------------------------------------------------------------------
def _proj_kernel(x_ref, w_ref, b_ref, o_ref):
    # bf16 MXU operands (pre-cast on host), f32 accumulation, single bf16 store.
    acc = jnp.dot(x_ref[...], w_ref[...], preferred_element_type=jnp.float32)
    o_ref[...] = (acc + b_ref[...]).astype(o_ref.dtype)


def _pick_tm(m):
    # Largest tile dividing M with >=2 grid steps (pipelining / megacore);
    # M is always a multiple of 64 (wrapper pads B to 8 and T to TC=8).
    cands = (512, 256, 128, 64, 32, 16, 8)
    for t in cands:
        if m % t == 0 and m // t >= 2:
            return t
    for t in cands:
        if m % t == 0:
            return t
    return m


def input_projection(x2d, w_cat, b_cat):
    """x2d: (M, E) bf16;  w_cat: (E, 8H) bf16;  b_cat: (8H,) f32 -> (M, 8H) bf16."""
    M, E = x2d.shape
    N = w_cat.shape[1]
    tm = _pick_tm(M)
    b2 = b_cat.reshape(1, N)
    return pl.pallas_call(
        _proj_kernel,
        out_shape=jax.ShapeDtypeStruct((M, N), jnp.bfloat16),
        grid=(M // tm,),
        in_specs=[pl.BlockSpec((tm, E), lambda i: (i, 0)),
                  pl.BlockSpec((E, N), lambda i: (0, 0)),   # W resident (bf16)
                  pl.BlockSpec((1, N), lambda i: (0, 0))],  # folded bias (f32)
        out_specs=pl.BlockSpec((tm, N), lambda i: (i, 0)),
        compiler_params=pltpu.CompilerParams(
            dimension_semantics=("parallel",),
            vmem_limit_bytes=32 * 1024 * 1024),
    )(x2d, w_cat, b2)


# ----------------------------------------------------------------------------
# Kernel B: chunked bidirectional masked LSTM scan
#   grid = (direction ("parallel"), time-chunk ("arbitrary" = sequential))
# ----------------------------------------------------------------------------
def _lstm_scan_kernel(len_ref, xp_ref, whh_ref, out_ref, hid_ref, c_ref,
                      *, hidden, tc, t_total):
    d = pl.program_id(0)          # 0 = forward, 1 = backward
    j = pl.program_id(1)          # time-chunk index (sequential)
    fwd = d == 0

    @pl.when(j == 0)
    def _():
        hid_ref[...] = jnp.zeros_like(hid_ref)   # final-hidden doubles as h carry
        c_ref[...] = jnp.zeros_like(c_ref)

    lengths = len_ref[...]        # (B, 1) int32, resident
    w = whh_ref[0]                # (H, 4H) bf16, resident
    chunk_start = jnp.where(fwd, j * tc, t_total - (j + 1) * tc)

    def body(k, carry):
        h, c = carry                                  # (B, H) f32 each
        local = jnp.where(fwd, k, tc - 1 - k)         # index within the chunk
        t = chunk_start + local                       # global timestep
        # xp already holds x_t @ W_ih^T + (b_ih + b_hh) from kernel A (bf16)
        xp = xp_ref[local].astype(jnp.float32)        # (B, 4H)
        gates = xp + jnp.dot(h.astype(jnp.bfloat16), w,
                             preferred_element_type=jnp.float32)
        i_g = jax.nn.sigmoid(gates[:, 0 * hidden:1 * hidden])
        f_g = jax.nn.sigmoid(gates[:, 1 * hidden:2 * hidden])
        g_g = jnp.tanh(gates[:, 2 * hidden:3 * hidden])
        o_g = jax.nn.sigmoid(gates[:, 3 * hidden:4 * hidden])
        c_new = f_g * c + i_g * g_g
        h_new = o_g * jnp.tanh(c_new)
        # packed-sequence semantics via a single select per tensor
        m = lengths > t                               # (B, 1) bool
        out_ref[local] = jnp.where(m, h_new, 0.0).astype(out_ref.dtype)
        return jnp.where(m, h_new, h), jnp.where(m, c_new, c)

    h, c = lax.fori_loop(0, tc, body, (hid_ref[0], c_ref[...]), unroll=True)
    hid_ref[0] = h
    c_ref[...] = c


def lstm_scan(xproj, w_h, lengths_col, *, hidden, time_chunk):
    """xproj: (T, B, 8H) bf16; w_h: (2, H, 4H) bf16; lengths_col: (B, 1) int32."""
    T_pad, B_pad, _ = xproj.shape
    H = hidden
    nT = T_pad // time_chunk
    kernel = functools.partial(_lstm_scan_kernel, hidden=H, tc=time_chunk,
                               t_total=T_pad)

    def time_block(d, j):
        # forward: chunk j ;  backward: chunk nT-1-j  (times reversed in-kernel)
        return d * (nT - 1) + (1 - 2 * d) * j

    return pl.pallas_call(
        kernel,
        out_shape=(jax.ShapeDtypeStruct((T_pad, B_pad, 2 * H), jnp.float32),
                   jax.ShapeDtypeStruct((2, B_pad, H), jnp.float32)),
        grid=(2, nT),
        in_specs=[
            pl.BlockSpec((B_pad, 1), lambda d, j: (0, 0)),            # lengths
            pl.BlockSpec((time_chunk, B_pad, 4 * H),
                         lambda d, j: (time_block(d, j), 0, d)),      # xproj chunk
            pl.BlockSpec((1, H, 4 * H), lambda d, j: (d, 0, 0)),      # W_hh (resident)
        ],
        out_specs=(
            pl.BlockSpec((time_chunk, B_pad, H),
                         lambda d, j: (time_block(d, j), 0, d)),      # (T,B,2H) output
            pl.BlockSpec((1, B_pad, H), lambda d, j: (d, 0, 0)),      # final h (resident)
        ),
        scratch_shapes=[pltpu.VMEM((B_pad, H), jnp.float32)],         # c carry
        compiler_params=pltpu.CompilerParams(
            dimension_semantics=("parallel", "arbitrary")),
    )(lengths_col, xproj, w_h)


# ----------------------------------------------------------------------------
# Parameters (PyTorch nn.LSTM layout, pre-transposed/folded/bf16-cast on host)
# ----------------------------------------------------------------------------
def init_params(key, embedding_size=256, hidden_dim=256):
    H = hidden_dim // 2
    bound = 1.0 / float(H) ** 0.5
    keys = jax.random.split(key, 8)

    def u(kk, shape):
        return jax.random.uniform(kk, shape, jnp.float32, -bound, bound)

    w_ih_f = u(keys[0], (4 * H, embedding_size))
    w_hh_f = u(keys[1], (4 * H, H))
    b_ih_f = u(keys[2], (4 * H,))
    b_hh_f = u(keys[3], (4 * H,))
    w_ih_b = u(keys[4], (4 * H, embedding_size))
    w_hh_b = u(keys[5], (4 * H, H))
    b_ih_b = u(keys[6], (4 * H,))
    b_hh_b = u(keys[7], (4 * H,))

    return {
        "hidden": H,
        # both directions' input projections concatenated -> one (E, 8H) bf16 matmul
        "w_x": jnp.concatenate([w_ih_f.T, w_ih_b.T], axis=1).astype(jnp.bfloat16),
        # biases folded once on the host (b_ih + b_hh per direction), kept f32
        "b": jnp.concatenate([b_ih_f + b_hh_f, b_ih_b + b_hh_b], axis=0),
        # recurrent weights stacked by direction, bf16 MXU operands
        "w_h": jnp.stack([w_hh_f.T, w_hh_b.T], axis=0).astype(jnp.bfloat16),
    }


# ----------------------------------------------------------------------------
# Forward pass  (mirrors BiLSTM.forward)
# ----------------------------------------------------------------------------
def bilstm_forward(params, input_, input_mask, time_chunk=8):
    """Returns (padded_outputs (B, T, 2H), hidden (2, B, H))."""
    B, T, E = input_.shape
    H = params["hidden"]

    lengths = input_mask.astype(jnp.int32).sum(-1)          # (B,)

    # pad batch to a multiple of 8 (dense sublanes) and time to a multiple of
    # the chunk size; padded rows get length 0, padded timesteps are masked.
    B_pad = -(-B // 8) * 8
    T_pad = -(-T // time_chunk) * time_chunk
    x = jnp.pad(input_, ((0, B_pad - B), (0, T_pad - T), (0, 0)))
    len_pad = jnp.pad(lengths, (0, B_pad - B))

    # ---- kernel A: x @ W_ih^T (+ folded biases), both directions at once ----
    x_tb = (jnp.transpose(x, (1, 0, 2))
            .reshape(T_pad * B_pad, E)
            .astype(jnp.bfloat16))
    xproj = input_projection(x_tb, params["w_x"], params["b"])   # (M, 8H) bf16
    xproj = xproj.reshape(T_pad, B_pad, 8 * H)

    # ---- kernel B: chunked bidirectional masked scan -------------------------
    out_tb, hid = lstm_scan(xproj, params["w_h"], len_pad.reshape(B_pad, 1),
                            hidden=H, time_chunk=time_chunk)

    outputs = jnp.transpose(out_tb, (1, 0, 2))[:B, :T]       # (B, T, 2H)
    hidden = hid[:, :B]                                      # (2, B, H)
    return outputs, hidden


if __name__ == "__main__":
    key = jax.random.PRNGKey(0)
    kp, kx = jax.random.split(key)

    # small shapes consistent with the module (defaults are E=768, hidden=512)
    B, T, E, HID = 2, 8, 256, 256
    params = init_params(kp, embedding_size=E, hidden_dim=HID)

    x = jax.random.normal(kx, (B, T, E), jnp.float32)
    lengths = jnp.array([T, 5], jnp.int32)                   # ragged batch
    mask = (jnp.arange(T)[None, :] < lengths[:, None]).astype(jnp.float32)

    outputs, hidden = bilstm_forward(params, x, mask)
    outputs, hidden = jax.block_until_ready((outputs, hidden))

    assert outputs.shape == (B, T, HID), outputs.shape
    assert hidden.shape == (2, B, HID // 2), hidden.shape
    assert bool(jnp.all(jnp.isfinite(outputs)))
    assert bool(jnp.all(jnp.isfinite(hidden)))
    # packed-sequence semantics: padded positions of the short sequence are 0
    assert bool(jnp.all(outputs[1, 5:] == 0.0))
    print("KERNEL_OK")
</pallas_src>

<mosaic_0001>
module attributes {stable_mosaic.version = 11 : i64} {
  func.func @_proj_kernel(%arg0: i32, %arg1: memref<32x256xbf16, #tpu.memory_space<vmem>>, %arg2: memref<256x1024xbf16, #tpu.memory_space<vmem>>, %arg3: memref<1x1024xf32, #tpu.memory_space<vmem>>, %arg4: memref<32x1024xbf16, #tpu.memory_space<vmem>>) attributes {dimension_semantics = [#tpu.dimension_semantics<parallel>], iteration_bounds = array<i64: 2>, scalar_prefetch = 0 : i64, scratch_operands = 0 : i64, tpu.core_type = #tpu.core_type<tc>, window_params = [{transform_indices = @transform_0, window_bounds = array<i64: 32, 256>}, {pipeline_mode = #tpu.pipeline_mode<synchronous>, transform_indices = @transform_1, window_bounds = array<i64: 256, 1024>}, {pipeline_mode = #tpu.pipeline_mode<synchronous>, transform_indices = @transform_2, window_bounds = array<i64: 1, 1024>}, {transform_indices = @transform_3, window_bounds = array<i64: 32, 1024>}]} {
    %c0 = arith.constant 0 : index
    %c0_0 = arith.constant 0 : index
    %0 = vector.load %arg1[%c0, %c0_0] : memref<32x256xbf16, #tpu.memory_space<vmem>>, vector<32x256xbf16>
    %c0_1 = arith.constant 0 : index
    %c0_2 = arith.constant 0 : index
    %1 = vector.load %arg2[%c0_1, %c0_2] : memref<256x1024xbf16, #tpu.memory_space<vmem>>, vector<256x1024xbf16>
    %cst = arith.constant dense<0.000000e+00> : vector<32x1024xf32>
    %2 = tpu.matmul %0, %1, %cst {dimension_numbers = #tpu.dot_dimension_numbers<[1], [0], [0], [1], [0, 0, 1, 1], [], []>} : vector<32x256xbf16>, vector<256x1024xbf16>, vector<32x1024xf32> -> vector<32x1024xf32>
    %c0_3 = arith.constant 0 : index
    %c0_4 = arith.constant 0 : index
    %3 = vector.load %arg3[%c0_3, %c0_4] : memref<1x1024xf32, #tpu.memory_space<vmem>>, vector<1x1024xf32>
    %4 = vector.broadcast %3 : vector<1x1024xf32> to vector<32x1024xf32>
    %5 = arith.addf %2, %4 : vector<32x1024xf32>
    %6 = arith.truncf %5 : vector<32x1024xf32> to vector<32x1024xbf16>
    %c0_5 = arith.constant 0 : index
    %c0_6 = arith.constant 0 : index
    %7 = vector.load %arg4[%c0_5, %c0_6] : memref<32x1024xbf16, #tpu.memory_space<vmem>>, vector<32x1024xbf16>
    tpu.vector_store %arg4[%c0_5, %c0_6], %6 {strides = array<i32>} : memref<32x1024xbf16, #tpu.memory_space<vmem>>, vector<32x1024xbf16>,
    return
  }
  func.func @transform_0(%arg0: i32) -> (i32, i32) {
    %c0_i32 = arith.constant 0 : i32
    %c0_i32_0 = arith.constant 0 : i32
    return %arg0, %c0_i32 : i32, i32
  }
  func.func @transform_1(%arg0: i32) -> (i32, i32) {
    %c0_i32 = arith.constant 0 : i32
    %c0_i32_0 = arith.constant 0 : i32
    %c0_i32_1 = arith.constant 0 : i32
    return %c0_i32, %c0_i32_0 : i32, i32
  }
  func.func @transform_2(%arg0: i32) -> (i32, i32) {
    %c0_i32 = arith.constant 0 : i32
    %c0_i32_0 = arith.constant 0 : i32
    %c0_i32_1 = arith.constant 0 : i32
    return %c0_i32, %c0_i32_0 : i32, i32
  }
  func.func @transform_3(%arg0: i32) -> (i32, i32) {
    %c0_i32 = arith.constant 0 : i32
    %c0_i32_0 = arith.constant 0 : i32
    return %arg0, %c0_i32 : i32, i32
  }
}

</mosaic_0001>

<bundles_post_ra>
// kernel: tpu_custom_call.1
= control target key start
LH: loop header
LB: loop body
LE: loop exit
PB: predicated region body
PF: predicated region fallthrough
CT: control target
= control target key end

     0   :  { %8 = vsyncpa [#allocation3], 0  ;;  %s2189_s0 = inlined_call_operand.hbm [shape: bf16[64,256], index: 0, kind: input, shape index: {}]   ;;  %s2190_s1 = inlined_call_operand.hbm [shape: bf16[256,1024], index: 1, kind: input, shape index: {}]   ;;  %s2191_s2 = inlined_call_operand.hbm [shape: f32[1,1024], index: 2, kind: input, shape index: {}]   ;;  %s2192_s3 = inlined_call_operand.hbm [shape: bf16[64,1024], index: 3, kind: output, shape index: {}]  }
   0x1   :  { %10 = vsyncpa [#allocation3 + $0x1], 0 }
   0x2   :  { %11 = vsyncpa [#allocation6], 0 }
   0x3   :  { %12 = vsyncpa [#allocation4], 0 }
   0x4   :  { %14 = vsyncpa [#allocation4 + $0x1], 0  ;;  %s1931_s12 = smov 0   ;;  %s1933_s13 = smov 0  }
   0x5   :  { %s1935_s14 = smov 0   ;;  %s1937_s15 = smov 0  }
   0x6 LB: > { %s1952_s16 = sadd.s32 4294967295, %s1899_s15   ;;  %s1484_s17 = sadd.s32 4294967294, %s1899_s15   ;;  %s1899_s15 = sphi %s1937_s15, %s2214_s15   ;;  %s1895_s14 = sphi %s1935_s14, %s2213_s14   ;;  %s1891_s13 = sphi %s1933_s13, %s2212_s13   ;;  %s1887_s12 = sphi %s1931_s12, %s2211_s12  }
   0x7   : > { %p40_p0 = scmp.ne.s32.totalorder %s1891_s13, %s1887_s12  ;;  %p2193_p1 = scmp.eq.s32.totalorder %s1952_s16, 0 }
   0x8   : > { %p112_p3 = scmp.eq.s32.totalorder %s1484_s17, 1  ;;  %p1485_p5 = scmp.ge.s32.totalorder %s1899_s15, 1 }
   0x9   : > { %p1961_p4 = por %p2193_p1, %p40_p0  ;;  %p119_p7 = scmp.lt.s32.totalorder %s1899_s15, 3 }
   0xa   : > { %p1966_p6 = por %p112_p3, %p40_p0  ;;  %s1901_s21 = smov [#allocation5]  }
   0xb   : > { %s2197_s18 = scalar_select %p1961_p4, 1, 0 }
   0xc   : > { %s2198_s19 = scalar_select %p1966_p6, 1, 0 }
   0xd   : > { %p1971_p8 = pnand %p1485_p5, %p119_p7  ;;  %s131_s22 = sshll.u32 %s1901_s21, 4  ;;  %s132_s22 = int_to_ptr.vmem [resolvable:$true] %s131_s22 }
   0xe   : > { %s1902_s24 = smov [#allocation7]   ;;  %s1762_s26 = scalar_lea.vmem %s132_s22, 16384 }
   0xf   : > { %s2199_s20 = scalar_select %p1971_p8, 1, 0 }
  0x10   : > { %p1684_p9 = pneg %p1971_p8  ;;  %s145_s25 = sshll.u32 %s1902_s24, 4  ;;  %s146_s25 = int_to_ptr.vmem [resolvable:$true] %s145_s25 }
  0x11   : > { %p1763_p13 = scmp.ne.s32.totalorder %s132_s22, %s1762_s26  ;;  %p1770_p5 = scmp.lt.s32.totalorder %s132_s22, %s132_s22 }
  0x12   : > { %p1980_p11 = pnand %p1684_p9, %p2193_p1  ;;  %p1771_p7 = scmp.lt.s32.totalorder %s1762_s26, %s1762_s26 }
  0x14   : > { %p1753_p12 = pneg %p1980_p11  ;;  %p1772_p10 = por %p1771_p7, %p1770_p5 }
  0x16   : > { %p1765_p0 = pnand %p1763_p13, %p1753_p12 }
  0x18   : > { %p1766_p3 = pneg %p1765_p0 }
  0x1a   : > { %p1773_p9 = pnand %p1772_p10, %p1766_p3 }
  0x1c   : > { %1776 = shalt.err (!%p1773_p9)
}
  0x1d   : > { %s1903_s27 = smov 512   ;;  %s1904_s28 = smov 32  }
  0x1e   : > { %1687 = dma.hbm_to_vmem [thread:$0]  (!%p1980_p11), %s2190_s1, 16384, %s132_s22, [#allocation6], %s1903_s27, %s1903_s27, %s1904_s28  }
  0x1f   : > { %s1788_s4 = scalar_lea.vmem %s146_s25, 128  ;;  %p1796_p2 = scmp.lt.s32.totalorder %s146_s25, %s146_s25 }
  0x20   : > { %p1789_p1 = scmp.ne.s32.totalorder %s146_s25, %s1788_s4  ;;  %p1797_p6 = scmp.lt.s32.totalorder %s1788_s4, %s1788_s4 }
  0x22   : > { %p1791_p13 = pnand %p1789_p1, %p1753_p12  ;;  %p1798_p5 = por %p1797_p6, %p1796_p2 }
  0x24   : > { %p1792_p0 = pneg %p1791_p13 }
  0x26   : > { %p1799_p10 = pnand %p1798_p5, %p1792_p0 }
  0x28   : > { %1802 = shalt.err (!%p1799_p10)
}
  0x29   : > { %1690 = dma.hbm_to_vmem [thread:$0]  (!%p1980_p11), %s2191_s2, 128, %s146_s25, [#allocation6]  }
  0x2a   : > { %s2003_s7 = sadd.s32 1, %s1899_s15   ;;  %s27_s8 = sadd.s32 1, %s1895_s14 }
  0x2b   : > { %s24_s9 = ssub.s32 %s1899_s15, %s2003_s7  ;;  %p34_p1 = scmp.ne.s32.totalorder %s1895_s14, %s1891_s13 }
  0x2c   : > { %p25_p2 = scmp.eq.s32.totalorder %s24_s9, 0  ;;  %p35_p6 = scmp.eq.s32.totalorder %s1899_s15, 0 }
  0x2d   : > { %p2201_p12 = scmp.eq.s32.totalorder %s1952_s16, 1  ;;  %p1701_p7 = scmp.lt.s32.totalorder %s1899_s15, 2 }
  0x2e   : > { %s2019_s11 = scalar_select %p25_p2, %s1895_s14, %s27_s8  }
  0x2f   : > { %p2013_p3 = por %p2201_p12, %p34_p1  ;;  %p36_p9 = por %p35_p6, %p34_p1 }
  0x30   : > { %s156_s17 = sand.u32 1, %s1895_s14   ;;  %s1653_s22 = sshll.u32 %s1899_s15, 9 }
  0x31   : > { %s2202_s10 = scalar_select %p2013_p3, 1, 0 }
  0x32   : > { %s1489_s21 = sshll.u32 %s156_s17, 5  ;;  %s2026_s25 = scalar_lea.hbm %s2189_s0, %s1653_s22 }
  0x33   : > { %s160_s26 = scalar_lea.vmem [#allocation2], %s1489_s21  ;;  %p2030_p11 = pnand %p1701_p7, %p36_p9 }
  0x34   : > { %s168_s27 = sshll.u32 %s160_s26, 4  ;;  %s2034_s29 = scalar_lea.sflag [#allocation3], %s156_s17  ;;  %s2028_s27 = int_to_ptr.vmem [resolvable:$true] %s168_s27 }
  0x35   : > { %s1803_s30 = scalar_lea.hbm %s2026_s25, 512  ;;  %p1805_p0 = pneg %p2030_p11 }
  0x36   : > { %p1804_p13 = scmp.ne.s32.totalorder %s2026_s25, %s1803_s30  ;;  %s1808_s6 = scalar_lea.hbm %s2189_s0, 1024 }
  0x37   : > { %p1809_p1 = scmp.lt.s32.totalorder %s2026_s25, %s2189_s0  ;;  %p1810_p2 = scmp.lt.s32.totalorder %s1808_s6, %s1803_s30 }
  0x38   : > { %p1806_p5 = pnand %p1805_p0, %p1804_p13 }
  0x39   : > { %p1811_p6 = por %p1810_p2, %p1809_p1 }
  0x3a   : > { %p1807_p10 = pneg %p1806_p5 }
  0x3c   : > { %p1812_p12 = pnand %p1811_p6, %p1807_p10 }
  0x3e   : > { %1815 = shalt.err (!%p1812_p12)
}
  0x3f   : > { %s1816_s17 = scalar_lea.vmem %s2028_s27, 512  ;;  %s1905_s21 = smov [#allocation2]  }
  0x40   : > { %p1817_p7 = scmp.ne.s32.totalorder %s2028_s27, %s1816_s17  ;;  %s1821_s22 = sshll.u32 %s1905_s21, 4  ;;  %s1822_s22 = int_to_ptr.vmem [resolvable:$false] %s1821_s22 }
  0x41   : > { %s1823_s23 = scalar_lea.vmem %s1822_s22, 1024  ;;  %p1824_p5 = scmp.lt.s32.totalorder %s2028_s27, %s1822_s22 }
  0x42   : > { %p1819_p9 = pnand %p1817_p7, %p1805_p0  ;;  %p1825_p3 = scmp.lt.s32.totalorder %s1823_s23, %s1816_s17 }
  0x44   : > { %p1820_p13 = pneg %p1819_p9  ;;  %p1826_p4 = por %p1825_p3, %p1824_p5 }
  0x46   : > { %p1827_p8 = pnand %p1826_p4, %p1820_p13 }
  0x48   : > { %1830 = shalt.err (!%p1827_p8)
}
  0x49   : > { %s1906_s24 = smov 128   ;;  %s1907_s26 = smov 8  }
  0x4a   : > { %1694 = dma.hbm_to_vmem [thread:$0]  (!%p2030_p11), %s2026_s25, 512, %s2028_s27, %s2034_s29, %s1906_s24, %s1906_s24, %s1907_s26  }
  0x4b   : > { %p2204_p0 = scmp.ne.s32.totalorder %s2199_s20, 0 }
  0x4c   : > { %s2058_s30 = sand.u32 (!%p2204_p0), 1, %s1891_s13   ;;  %p2205_p4 = scmp.ne.s32.totalorder (!%p2204_p0), %s2197_s18, 0 }
  0x4d   : > { %180 = sbr.rel (%p2204_p0) target bundleno = 443 (0x1bb), region = 32  ;;  %s1494_s4 = sshll.u32 (!%p2204_p0), %s2058_s30, 5 }
  0x4e   : > { %s183_s5 = scalar_lea.sflag (!%p2204_p0), [#allocation3], %s2058_s30  ;;  %s2062_s6 = scalar_lea.vmem (!%p2204_p0), [#allocation2], %s1494_s4 }
  0x52   : > { %1874 = dma.done.wait (%p2205_p4), %s183_s5, 512  }
  0x53   : > { %1876 = vsyncadd (%p2205_p4), %s183_s5, 4294966784  ;;  %p2206_p8 = scmp.eq.s32.totalorder %s1952_s16, 0 }
  0x55   : > { %1878 = dma.done.wait (%p2206_p8), [#allocation6], 16512   ;;  %p2207_p3 = pmov %p2206_p8 }
  0x56   : > { %v279_v0 = vld [vmem:[#allocation5 + $0x1c0] sm:$0xff]  ;;  %v280_v2 = vld [vmem:[#allocation5 + $0x1c8] sm:$0xff]  ;;  %s1497_s18 = sshll.u32 %s2058_s30, 7  ;;  %s1671_s25 = sshll.u32 %s1952_s16, 11 }
  0x57   : > { %1880 = vsyncadd (%p2207_p3), [#allocation6], 4294950784  ;;  %v283_v1 = vld [vmem:[#allocation5 + $0x1e0] sm:$0xff]  ;;  %v284_v4 = vld [vmem:[#allocation5 + $0x1e8] sm:$0xff]  ;;  %s2113_s20 = scalar_lea.vmem [#allocation8], %s1497_s18  ;;  %s2142_s8 = scalar_lea.hbm %s2192_s3, %s1671_s25 }
  0x58   : > { %v1559_v3 = vcombine.high %v279_v0, %v283_v1  ;;  %v1558_v5 = vcombine.low %v279_v0, %v283_v1  ;;  %v271_v6 = vld [vmem:[#allocation5 + $0x180] sm:$0xff]  ;;  %v1561_v8 = vcombine.high %v280_v2, %v284_v4  ;;  %v1560_v9 = vcombine.low %v280_v2, %v284_v4  ;;  %v272_v11 = vld [vmem:[#allocation5 + $0x188] sm:$0xff]  ;;  %s1392_s27 = sshll.u32 %s2113_s20, 4  ;;  %s1378_s16 = scalar_lea.sflag [#allocation4], %s2058_s30  ;;  %s2144_s27 = int_to_ptr.vmem [resolvable:$true] %s1392_s27 }
  0x59   : > { %v275_v7 = vld [vmem:[#allocation5 + $0x1a0] sm:$0xff]  ;;  %v276_v12 = vld [vmem:[#allocation5 + $0x1a8] sm:$0xff]  ;;  %s1831_s9 = scalar_lea.vmem %s2144_s27, 2048  ;;  %p2208_p10 = scmp.ne.s32.totalorder %s2202_s10, 0 }
  0x5a   : > { %v1551_v10 = vcombine.high %v271_v6, %v275_v7  ;;  %v263_v13 = vld [vmem:[#allocation5 + $0x140] sm:$0xff]  ;;  %1053 = vmatprep.subr.bf16.mxu0 %v1559_v3  ;;  %v1553_v14 = vcombine.high %v272_v11, %v276_v12  ;;  %v264_v16 = vld [vmem:[#allocation5 + $0x148] sm:$0xff]  ;;  %1106 = vmatprep.subr.bf16.mxu1 %v1561_v8  ;;  %v1550_v18 = vcombine.low %v271_v6, %v275_v7  ;;  %p1832_p11 = scmp.ne.s32.totalorder %s2144_s27, %s1831_s9  ;;  %s1908_s17 = smov [#allocation8]  }
  0x5b   : > { %v267_v15 = vld [vmem:[#allocation5 + $0x160] sm:$0xff]  ;;  %v268_v17 = vld [vmem:[#allocation5 + $0x168] sm:$0xff]  ;;  %1054 = vmatpush1.bf16.msra.mxu0 %v1558_v5  ;;  %1107 = vmatpush1.bf16.msra.mxu1 %v1560_v9  ;;  %v1552_v19 = vcombine.low %v272_v11, %v276_v12  ;;  %s1835_s21 = sshll.u32 %s1908_s17, 4  ;;  %s1836_s21 = int_to_ptr.vmem [resolvable:$false] %s1835_s21 }
  0x5c   : > { %1055 = vmatprep.subr.bf16.mxu0 %v1551_v10  ;;  %v1543_v20 = vcombine.high %v263_v13, %v267_v15  ;;  %1108 = vmatprep.subr.bf16.mxu1 %v1553_v14  ;;  %v1545_v21 = vcombine.high %v264_v16, %v268_v17  ;;  %v255_v22 = vld [vmem:[#allocation5 + $0x100] sm:$0xff]  ;;  %v256_v24 = vld [vmem:[#allocation5 + $0x108] sm:$0xff]  ;;  %v1542_v26 = vcombine.low %v263_v13, %v267_v15  ;;  %p1833_p1 = pnand %p1832_p11, %p2208_p10  ;;  %s1837_s22 = scalar_lea.vmem %s1836_s21, 4096 }
  0x5d   : > { %v259_v23 = vld [vmem:[#allocation5 + $0x120] sm:$0xff]  ;;  %v260_v25 = vld [vmem:[#allocation5 + $0x128] sm:$0xff]  ;;  %v1544_v27 = vcombine.low %v264_v16, %v268_v17  ;;  %p1838_p6 = scmp.lt.s32.totalorder %s2144_s27, %s1836_s21  ;;  %p1839_p12 = scmp.lt.s32.totalorder %s1837_s22, %s1831_s9 }
  0x5e   : > { %v1535_v28 = vcombine.high %v255_v22, %v259_v23  ;;  %v1537_v29 = vcombine.high %v256_v24, %v260_v25  ;;  %v247_v30 = vld [vmem:[#allocation5 + $0xc0] sm:$0xff]  ;;  %v248_v32 = vld [vmem:[#allocation5 + $0xc8] sm:$0xff]  ;;  %v1534_v34 = vcombine.low %v255_v22, %v259_v23  ;;  %v1536_v35 = vcombine.low %v256_v24, %v260_v25  ;;  %p1834_p2 = pneg %p1833_p1 }
  0x5f   : > { %1056 = vmatpush1.bf16.msra.mxu0 %v1550_v18  ;;  %1109 = vmatpush1.bf16.msra.mxu1 %v1552_v19  ;;  %v251_v31 = vld [vmem:[#allocation5 + $0xe0] sm:$0xff]  ;;  %v252_v33 = vld [vmem:[#allocation5 + $0xe8] sm:$0xff]  ;;  %p1840_p7 = por %p1839_p12, %p1838_p6 }
  0x60   : > { %1057 = vmatprep.subr.bf16.mxu0 %v1543_v20  ;;  %1110 = vmatprep.subr.bf16.mxu1 %v1545_v21  ;;  %v1527_v36 = vcombine.high %v247_v30, %v251_v31  ;;  %v1529_v37 = vcombine.high %v248_v32, %v252_v33  ;;  %v239_v38 = vld [vmem:[#allocation5 + $0x80] sm:$0xff]  ;;  %v240_v40 = vld [vmem:[#allocation5 + $0x88] sm:$0xff]  ;;  %v1526_v42 = vcombine.low %v247_v30, %v251_v31 }
  0x61   : > { %v243_v39 = vld [vmem:[#allocation5 + $0xa0] sm:$0xff]  ;;  %v244_v41 = vld [vmem:[#allocation5 + $0xa8] sm:$0xff]  ;;  %v1528_v43 = vcombine.low %v248_v32, %v252_v33  ;;  %p1841_p9 = pnand %p1840_p7, %p1834_p2 }
  0x62   : > { %v1519_v44 = vcombine.high %v239_v38, %v243_v39  ;;  %v1521_v45 = vcombine.high %v240_v40, %v244_v41  ;;  %v231_v46 = vld [vmem:[#allocation5 + $0x40] sm:$0xff]  ;;  %v232_v48 = vld [vmem:[#allocation5 + $0x48] sm:$0xff]  ;;  %v1518_v50 = vcombine.low %v239_v38, %v243_v39  ;;  %v1520_v51 = vcombine.low %v240_v40, %v244_v41 }
  0x63   : > { %1058 = vmatpush1.bf16.msra.mxu0 %v1542_v26  ;;  %1111 = vmatpush1.bf16.msra.mxu1 %v1544_v27  ;;  %v235_v47 = vld [vmem:[#allocation5 + $0x60] sm:$0xff]  ;;  %v236_v49 = vld [vmem:[#allocation5 + $0x68] sm:$0xff] }
  0x64   : > { %1059 = vmatprep.subr.bf16.mxu0 %v1535_v28  ;;  %1112 = vmatprep.subr.bf16.mxu1 %v1537_v29  ;;  %v1511_v52 = vcombine.high %v231_v46, %v235_v47  ;;  %v1513_v53 = vcombine.high %v232_v48, %v236_v49  ;;  %v223_v54 = vld [vmem:[#allocation5] sm:$0xff]  ;;  %v224_v57 = vld [vmem:[#allocation5 + $0x8] sm:$0xff]  ;;  %v1510_v59 = vcombine.low %v231_v46, %v235_v47 }
  0x65   : > { %v227_v55 = vld [vmem:[#allocation5 + $0x20] sm:$0xff]  ;;  %v228_v58 = vld [vmem:[#allocation5 + $0x28] sm:$0xff]  ;;  %v1512_v60 = vcombine.low %v232_v48, %v236_v49 }
  0x66   : > { %v2073_v56 = vld [vmem:[%s2062_s6 + $0x4] ss:$8 sps:$4 sm:$0xff]   ;;  %v1503_v61 = vcombine.high %v223_v54, %v227_v55  ;;  %v1505_v62 = vcombine.high %v224_v57, %v228_v58  ;;  %v1502_v3 = vcombine.low %v223_v54, %v227_v55  ;;  %v1504_v4 = vcombine.low %v224_v57, %v228_v58 }
  0x67   : > { %1060 = vmatpush1.bf16.msra.mxu0 %v1534_v34  ;;  %1113 = vmatpush1.bf16.msra.mxu1 %v1536_v35  ;;  %v343_v63 = vld [vmem:[#allocation5 + $0x3c0] sm:$0xff]  ;;  %v344_v1 = vld [vmem:[#allocation5 + $0x3c8] sm:$0xff] }
  0x68   : > { %1061 = vmatprep.subr.bf16.mxu0 %v1527_v36  ;;  %1114 = vmatprep.subr.bf16.mxu1 %v1529_v37  ;;  %v347_v0 = vld [vmem:[#allocation5 + $0x3e0] sm:$0xff]  ;;  %v348_v2 = vld [vmem:[#allocation5 + $0x3e8] sm:$0xff] }
  0x69   : > { %1085 = vmatprep.mubr.bf16.mxu0 %v2073_v56  ;;  %1138 = vmatprep.mubr.bf16.mxu1 %v2073_v56  ;;  %v1623_v5 = vcombine.high %v343_v63, %v347_v0  ;;  %v1625_v6 = vcombine.high %v344_v1, %v348_v2  ;;  %v335_v7 = vld [vmem:[#allocation5 + $0x380] sm:$0xff]  ;;  %v336_v9 = vld [vmem:[#allocation5 + $0x388] sm:$0xff]  ;;  %v1622_v11 = vcombine.low %v343_v63, %v347_v0  ;;  %v281_v0 = vld [vmem:[#allocation5 + $0x1d0] sm:$0xff] }
  0x6a   : > { %v339_v8 = vld [vmem:[#allocation5 + $0x3a0] sm:$0xff]  ;;  %v340_v10 = vld [vmem:[#allocation5 + $0x3a8] sm:$0xff]  ;;  %v1624_v12 = vcombine.low %v344_v1, %v348_v2  ;;  %v285_v1 = vld [vmem:[#allocation5 + $0x1f0] sm:$0xff] }
  0x6b   : > { %1062 = vmatpush1.bf16.msra.mxu0 %v1526_v42  ;;  %1115 = vmatpush1.bf16.msra.mxu1 %v1528_v43  ;;  %v1615_v13 = vcombine.high %v335_v7, %v339_v8  ;;  %v1617_v14 = vcombine.high %v336_v9, %v340_v10  ;;  %v327_v15 = vld [vmem:[#allocation5 + $0x340] sm:$0xff]  ;;  %v328_v17 = vld [vmem:[#allocation5 + $0x348] sm:$0xff]  ;;  %v1614_v19 = vcombine.low %v335_v7, %v339_v8  ;;  %v282_v2 = vld [vmem:[#allocation5 + $0x1d8] sm:$0xff] }
  0x6c   : > { %1063 = vmatprep.subr.bf16.mxu0 %v1519_v44  ;;  %1116 = vmatprep.subr.bf16.mxu1 %v1521_v45  ;;  %v331_v16 = vld [vmem:[#allocation5 + $0x360] sm:$0xff]  ;;  %v332_v18 = vld [vmem:[#allocation5 + $0x368] sm:$0xff]  ;;  %v1616_v20 = vcombine.low %v336_v9, %v340_v10  ;;  %v273_v8 = vld [vmem:[#allocation5 + $0x190] sm:$0xff] }
  0x6d   : > { %v1607_v21 = vcombine.high %v327_v15, %v331_v16  ;;  %v1609_v22 = vcombine.high %v328_v17, %v332_v18  ;;  %v319_v23 = vld [vmem:[#allocation5 + $0x300] sm:$0xff]  ;;  %v320_v25 = vld [vmem:[#allocation5 + $0x308] sm:$0xff]  ;;  %v1606_v27 = vcombine.low %v327_v15, %v331_v16  ;;  %v1608_v28 = vcombine.low %v328_v17, %v332_v18  ;;  %v277_v9 = vld [vmem:[#allocation5 + $0x1b0] sm:$0xff] }
  0x6e   : > { %v323_v24 = vld [vmem:[#allocation5 + $0x320] sm:$0xff]  ;;  %v324_v26 = vld [vmem:[#allocation5 + $0x328] sm:$0xff]  ;;  %v1555_v15 = vcombine.high %v273_v8, %v277_v9  ;;  %v265_v17 = vld [vmem:[#allocation5 + $0x150] sm:$0xff] }
  0x6f   : > { %1064 = vmatpush1.bf16.msra.mxu0 %v1518_v50  ;;  %1117 = vmatpush1.bf16.msra.mxu1 %v1520_v51  ;;  %v1599_v29 = vcombine.high %v319_v23, %v323_v24  ;;  %v1601_v30 = vcombine.high %v320_v25, %v324_v26  ;;  %v311_v31 = vld [vmem:[#allocation5 + $0x2c0] sm:$0xff]  ;;  %v312_v33 = vld [vmem:[#allocation5 + $0x2c8] sm:$0xff]  ;;  %v1598_v35 = vcombine.low %v319_v23, %v323_v24  ;;  %v269_v18 = vld [vmem:[#allocation5 + $0x170] sm:$0xff] }
  0x70   : > { %1065 = vmatprep.subr.bf16.mxu0 %v1511_v52  ;;  %1118 = vmatprep.subr.bf16.mxu1 %v1513_v53  ;;  %v315_v32 = vld [vmem:[#allocation5 + $0x2e0] sm:$0xff]  ;;  %v316_v34 = vld [vmem:[#allocation5 + $0x2e8] sm:$0xff]  ;;  %v1600_v36 = vcombine.low %v320_v25, %v324_v26  ;;  %v1547_v24 = vcombine.high %v265_v17, %v269_v18  ;;  %v257_v26 = vld [vmem:[#allocation5 + $0x110] sm:$0xff] }
  0x71   : > { %v1591_v37 = vcombine.high %v311_v31, %v315_v32  ;;  %v1593_v38 = vcombine.high %v312_v33, %v316_v34  ;;  %v303_v39 = vld [vmem:[#allocation5 + $0x280] sm:$0xff]  ;;  %v304_v41 = vld [vmem:[#allocation5 + $0x288] sm:$0xff]  ;;  %v1590_v43 = vcombine.low %v311_v31, %v315_v32  ;;  %v1592_v44 = vcombine.low %v312_v33, %v316_v34 }
  0x72   : > { %v307_v40 = vld [vmem:[#allocation5 + $0x2a0] sm:$0xff]  ;;  %v308_v42 = vld [vmem:[#allocation5 + $0x2a8] sm:$0xff]  ;;  %v1546_v31 = vcombine.low %v265_v17, %v269_v18 }
  0x73   : > { %1066 = vmatpush1.bf16.msra.mxu0 %v1510_v59  ;;  %1119 = vmatpush1.bf16.msra.mxu1 %v1512_v60  ;;  %v1583_v45 = vcombine.high %v303_v39, %v307_v40  ;;  %v1585_v46 = vcombine.high %v304_v41, %v308_v42  ;;  %v295_v47 = vld [vmem:[#allocation5 + $0x240] sm:$0xff]  ;;  %v296_v49 = vld [vmem:[#allocation5 + $0x248] sm:$0xff]  ;;  %v1582_v51 = vcombine.low %v303_v39, %v307_v40 }
  0x74   : > { %1067 = vmatprep.subr.bf16.mxu0 %v1503_v61  ;;  %1120 = vmatprep.subr.bf16.mxu1 %v1505_v62  ;;  %v299_v48 = vld [vmem:[#allocation5 + $0x260] sm:$0xff]  ;;  %v300_v50 = vld [vmem:[#allocation5 + $0x268] sm:$0xff]  ;;  %v1584_v52 = vcombine.low %v304_v41, %v308_v42 }
  0x75   : > { %v1575_v53 = vcombine.high %v295_v47, %v299_v48  ;;  %v1577_v54 = vcombine.high %v296_v49, %v300_v50  ;;  %v287_v55 = vld [vmem:[#allocation5 + $0x200] sm:$0xff]  ;;  %v288_v58 = vld [vmem:[#allocation5 + $0x208] sm:$0xff]  ;;  %v1574_v60 = vcombine.low %v295_v47, %v299_v48  ;;  %v1576_v61 = vcombine.low %v296_v49, %v300_v50 }
  0x76   : > { %v291_v57 = vld [vmem:[#allocation5 + $0x220] sm:$0xff]  ;;  %v292_v59 = vld [vmem:[#allocation5 + $0x228] sm:$0xff] }
  0x77   : > { %1068 = vmatpush1.bf16.msra.mxu0 %v1502_v3  ;;  %1121 = vmatpush1.bf16.msra.mxu1 %v1504_v4  ;;  %v1567_v62 = vcombine.high %v287_v55, %v291_v57  ;;  %v1569_v63 = vcombine.high %v288_v58, %v292_v59  ;;  %v286_v3 = vld [vmem:[#allocation5 + $0x1f8] sm:$0xff]  ;;  %v1566_v4 = vcombine.low %v287_v55, %v291_v57  ;;  %v2078_v10 = vld [vmem:[%s2062_s6] ss:$8 sps:$4 sm:$0xff]  }
  0x78   : > { %1069 = vmatprep.subr.bf16.mxu0 %v1623_v5  ;;  %1122 = vmatprep.subr.bf16.mxu1 %v1625_v6  ;;  %v1568_v5 = vcombine.low %v288_v58, %v292_v59  ;;  %v1563_v6 = vcombine.high %v281_v0, %v285_v1  ;;  %v1565_v7 = vcombine.high %v282_v2, %v286_v3  ;;  %v225_v59 = vld [vmem:[#allocation5 + $0x10] sm:$0xff] }
  0x7b   : > { %1070 = vmatpush2.bf16.msra.mxu0 %v1622_v11  ;;  %1123 = vmatpush2.bf16.msra.mxu1 %v1624_v12  ;;  %v274_v11 = vld [vmem:[#allocation5 + $0x198] sm:$0xff] }
  0x7c   : > { %1071 = vmatprep.subr.bf16.mxu0 %v1615_v13  ;;  %1124 = vmatprep.subr.bf16.mxu1 %v1617_v14  ;;  %v278_v12 = vld [vmem:[#allocation5 + $0x1b8] sm:$0xff]  ;;  %v1562_v13 = vcombine.low %v281_v0, %v285_v1  ;;  %v1564_v14 = vcombine.low %v282_v2, %v286_v3  ;;  %v345_v3 = vld [vmem:[#allocation5 + $0x3d0] sm:$0xff] }
  0x7d   : > { %v1557_v16 = vcombine.high %v274_v11, %v278_v12  ;;  %v1556_v23 = vcombine.low %v274_v11, %v278_v12  ;;  %v337_v12 = vld [vmem:[#allocation5 + $0x390] sm:$0xff] }
  0x7f   : > { %1072 = vmatpush2.bf16.msra.mxu0 %v1614_v19  ;;  %1125 = vmatpush2.bf16.msra.mxu1 %v1616_v20  ;;  %v2081_v19 = vld [vmem:[%s2062_s6 + $0x14] ss:$8 sps:$4 sm:$0xff]  }
  0x80   : > { %1073 = vmatprep.subr.bf16.mxu0 %v1607_v21  ;;  %1126 = vmatprep.subr.bf16.mxu1 %v1609_v22  ;;  %v266_v20 = vld [vmem:[#allocation5 + $0x158] sm:$0xff]  ;;  %v1554_v22 = vcombine.low %v273_v8, %v277_v9 }
  0x81   : > { %v270_v21 = vld [vmem:[#allocation5 + $0x178] sm:$0xff] }
  0x82   : > { %v1549_v25 = vcombine.high %v266_v20, %v270_v21  ;;  %v1548_v32 = vcombine.low %v266_v20, %v270_v21  ;;  %v329_v21 = vld [vmem:[#allocation5 + $0x350] sm:$0xff] }
  0x83   : > { %1074 = vmatpush2.bf16.msra.mxu0 %v1606_v27  ;;  %1127 = vmatpush2.bf16.msra.mxu1 %v1608_v28  ;;  %v261_v27 = vld [vmem:[#allocation5 + $0x130] sm:$0xff]  ;;  %v258_v28 = vld [vmem:[#allocation5 + $0x118] sm:$0xff] }
  0x84   : > { %1075 = vmatprep.subr.bf16.mxu0 %v1599_v29  ;;  %1128 = vmatprep.subr.bf16.mxu1 %v1601_v30  ;;  %v262_v29 = vld [vmem:[#allocation5 + $0x138] sm:$0xff]  ;;  %v1539_v33 = vcombine.high %v257_v26, %v261_v27  ;;  %v1538_v39 = vcombine.low %v257_v26, %v261_v27 }
  0x85   : > { %v2088_v30 = vld [vmem:[%s2062_s6 + $0x10] ss:$8 sps:$4 sm:$0xff]   ;;  %v1541_v34 = vcombine.high %v258_v28, %v262_v29  ;;  %v1540_v40 = vcombine.low %v258_v28, %v262_v29 }
  0x86   : > { %v321_v29 = vld [vmem:[#allocation5 + $0x310] sm:$0xff] }
  0x87   : > { %1076 = vmatpush2.bf16.msra.mxu0 %v1598_v35  ;;  %1129 = vmatpush2.bf16.msra.mxu1 %v1600_v36  ;;  %v249_v35 = vld [vmem:[#allocation5 + $0xd0] sm:$0xff] }
  0x88   : > { %1077 = vmatprep.subr.bf16.mxu0 %v1591_v37  ;;  %1130 = vmatprep.subr.bf16.mxu1 %v1593_v38  ;;  %v253_v36 = vld [vmem:[#allocation5 + $0xf0] sm:$0xff]  ;;  %v250_v37 = vld [vmem:[#allocation5 + $0xd8] sm:$0xff] }
  0x89   : > { %v254_v38 = vld [vmem:[#allocation5 + $0xf8] sm:$0xff]  ;;  %v1531_v41 = vcombine.high %v249_v35, %v253_v36  ;;  %v1530_v47 = vcombine.low %v249_v35, %v253_v36 }
  0x8a   : > { %v1533_v42 = vcombine.high %v250_v37, %v254_v38  ;;  %v1532_v48 = vcombine.low %v250_v37, %v254_v38  ;;  %v313_v38 = vld [vmem:[#allocation5 + $0x2d0] sm:$0xff] }
  0x8b   : > { %1078 = vmatpush2.bf16.msra.mxu0 %v1590_v43  ;;  %1131 = vmatpush2.bf16.msra.mxu1 %v1592_v44  ;;  %v241_v43 = vld [vmem:[#allocation5 + $0x90] sm:$0xff] }
  0x8c   : > { %1079 = vmatprep.subr.bf16.mxu0 %v1583_v45  ;;  %1132 = vmatprep.subr.bf16.mxu1 %v1585_v46  ;;  %v245_v44 = vld [vmem:[#allocation5 + $0xb0] sm:$0xff]  ;;  %v242_v45 = vld [vmem:[#allocation5 + $0x98] sm:$0xff] }
  0x8d   : > { %v246_v46 = vld [vmem:[#allocation5 + $0xb8] sm:$0xff]  ;;  %v1523_v49 = vcombine.high %v241_v43, %v245_v44  ;;  %v1522_v55 = vcombine.low %v241_v43, %v245_v44 }
  0x8e   : > { %v1525_v50 = vcombine.high %v242_v45, %v246_v46  ;;  %v1524_v57 = vcombine.low %v242_v45, %v246_v46  ;;  %v305_v46 = vld [vmem:[#allocation5 + $0x290] sm:$0xff] }
  0x8f   : > { %1080 = vmatpush2.bf16.msra.mxu0 %v1582_v51  ;;  %1133 = vmatpush2.bf16.msra.mxu1 %v1584_v52  ;;  %v233_v51 = vld [vmem:[#allocation5 + $0x50] sm:$0xff] }
  0x90   : > { %1081 = vmatprep.subr.bf16.mxu0 %v1575_v53  ;;  %1134 = vmatprep.subr.bf16.mxu1 %v1577_v54  ;;  %v237_v52 = vld [vmem:[#allocation5 + $0x70] sm:$0xff]  ;;  %v234_v53 = vld [vmem:[#allocation5 + $0x58] sm:$0xff] }
  0x91   : > { %v238_v54 = vld [vmem:[#allocation5 + $0x78] sm:$0xff]  ;;  %v1515_v58 = vcombine.high %v233_v51, %v237_v52 }
  0x92   : > { %v1516_v0 = vcombine.low %v234_v53, %v238_v54 }
  0x93   : > { %1082 = vmatpush2.bf16.msra.mxu0 %v1574_v60  ;;  %1135 = vmatpush2.bf16.msra.mxu1 %v1576_v61  ;;  %v229_v60 = vld [vmem:[#allocation5 + $0x30] sm:$0xff]  ;;  %v226_v61 = vld [vmem:[#allocation5 + $0x18] sm:$0xff] }
  0x94   : > { %1083 = vmatprep.subr.bf16.mxu0 %v1567_v62  ;;  %1136 = vmatprep.subr.bf16.mxu1 %v1569_v63  ;;  %v230_v62 = vld [vmem:[#allocation5 + $0x38] sm:$0xff]  ;;  %v1514_v63 = vcombine.low %v233_v51, %v237_v52  ;;  %v1507_v1 = vcombine.high %v225_v59, %v229_v60 }
  0x95   : > { %v1509_v2 = vcombine.high %v226_v61, %v230_v62  ;;  %v1508_v8 = vcombine.low %v226_v61, %v230_v62  ;;  %v289_v62 = vld [vmem:[#allocation5 + $0x210] sm:$0xff] }
  0x97   : > { %1084 = vmatpush2.bf16.msra.mxu0 %v1566_v4  ;;  %1137 = vmatpush2.bf16.msra.mxu1 %v1568_v5  ;;  %v349_v4 = vld [vmem:[#allocation5 + $0x3f0] sm:$0xff]  ;;  %v346_v5 = vld [vmem:[#allocation5 + $0x3d8] sm:$0xff] }
  0x98   : > { %1159 = vmatprep.subr.bf16.mxu0 %v1563_v6  ;;  %1212 = vmatprep.subr.bf16.mxu1 %v1565_v7  ;;  %v350_v6 = vld [vmem:[#allocation5 + $0x3f8] sm:$0xff]  ;;  %v1506_v7 = vcombine.low %v225_v59, %v229_v60  ;;  %v1627_v9 = vcombine.high %v345_v3, %v349_v4 }
  0x99   : > { %v1629_v11 = vcombine.high %v346_v5, %v350_v6  ;;  %v1628_v17 = vcombine.low %v346_v5, %v350_v6 }
  0x9a   : > { %1086 = vmatmul.mubr.bf16.vlgmr.msra.gmra.mxu0 %v2078_v10  ;;  %1139 = vmatmul.mubr.bf16.vlgmr.msra.gmra.mxu1 %v2078_v10 }
  0x9b   : > { %1160 = vmatpush1.bf16.msra.mxu0 %v1562_v13  ;;  %1213 = vmatpush1.bf16.msra.mxu1 %v1564_v14  ;;  %v341_v13 = vld [vmem:[#allocation5 + $0x3b0] sm:$0xff]  ;;  %v338_v14 = vld [vmem:[#allocation5 + $0x398] sm:$0xff] }
  0x9c   : > { %1161 = vmatprep.subr.bf16.mxu0 %v1555_v15  ;;  %1214 = vmatprep.subr.bf16.mxu1 %v1557_v16  ;;  %v342_v15 = vld [vmem:[#allocation5 + $0x3b8] sm:$0xff]  ;;  %v1626_v16 = vcombine.low %v345_v3, %v349_v4  ;;  %v1619_v18 = vcombine.high %v337_v12, %v341_v13 }
  0x9d   : > { %1095 = vmatprep.mubr.bf16.mxu0 %v2081_v19  ;;  %1148 = vmatprep.mubr.bf16.mxu1 %v2081_v19  ;;  %v1621_v20 = vcombine.high %v338_v14, %v342_v15  ;;  %v1620_v26 = vcombine.low %v338_v14, %v342_v15 }
  0x9f   : > { %1162 = vmatpush1.bf16.msra.mxu0 %v1554_v22  ;;  %1215 = vmatpush1.bf16.msra.mxu1 %v1556_v23  ;;  %v333_v22 = vld [vmem:[#allocation5 + $0x370] sm:$0xff]  ;;  %v330_v23 = vld [vmem:[#allocation5 + $0x358] sm:$0xff] }
  0xa0   : > { %1163 = vmatprep.subr.bf16.mxu0 %v1547_v24  ;;  %1216 = vmatprep.subr.bf16.mxu1 %v1549_v25  ;;  %v334_v24 = vld [vmem:[#allocation5 + $0x378] sm:$0xff]  ;;  %v1618_v25 = vcombine.low %v337_v12, %v341_v13  ;;  %v1611_v27 = vcombine.high %v329_v21, %v333_v22  ;;  %v2103_v12 = vld [vmem:[#allocation7] sm:$0xff] }
  0xa1   : > { %v1613_v28 = vcombine.high %v330_v23, %v334_v24  ;;  %v1612_v35 = vcombine.low %v330_v23, %v334_v24 }
  0xa2   : > { %1096 = vmatmul.mubr.bf16.gmra.mxu0 %v2088_v30  ;;  %1149 = vmatmul.mubr.bf16.gmra.mxu1 %v2088_v30 }
  0xa3   : > { %1164 = vmatpush1.bf16.msra.mxu0 %v1546_v31  ;;  %1217 = vmatpush1.bf16.msra.mxu1 %v1548_v32  ;;  %v325_v31 = vld [vmem:[#allocation5 + $0x330] sm:$0xff]  ;;  %v322_v32 = vld [vmem:[#allocation5 + $0x318] sm:$0xff] }
  0xa4   : > { %1165 = vmatprep.subr.bf16.mxu0 %v1539_v33  ;;  %1218 = vmatprep.subr.bf16.mxu1 %v1541_v34  ;;  %v326_v33 = vld [vmem:[#allocation5 + $0x338] sm:$0xff]  ;;  %v1610_v34 = vcombine.low %v329_v21, %v333_v22  ;;  %v1603_v36 = vcombine.high %v321_v29, %v325_v31 }
  0xa5   : > { %1191 = vmatprep.mubr.bf16.mxu0 %v2073_v56  ;;  %1244 = vmatprep.mubr.bf16.mxu1 %v2073_v56  ;;  %v1517_v56 = vcombine.high %v234_v53, %v238_v54  ;;  %v1605_v37 = vcombine.high %v322_v32, %v326_v33  ;;  %v1604_v43 = vcombine.low %v322_v32, %v326_v33  ;;  %v297_v54 = vld [vmem:[#allocation5 + $0x250] sm:$0xff] }
  0xa7   : > { %1166 = vmatpush1.bf16.msra.mxu0 %v1538_v39  ;;  %1219 = vmatpush1.bf16.msra.mxu1 %v1540_v40  ;;  %v317_v39 = vld [vmem:[#allocation5 + $0x2f0] sm:$0xff]  ;;  %v314_v40 = vld [vmem:[#allocation5 + $0x2d8] sm:$0xff] }
  0xa8   : > { %1167 = vmatprep.subr.bf16.mxu0 %v1531_v41  ;;  %1220 = vmatprep.subr.bf16.mxu1 %v1533_v42  ;;  %v318_v41 = vld [vmem:[#allocation5 + $0x2f8] sm:$0xff]  ;;  %v1602_v42 = vcombine.low %v321_v29, %v325_v31  ;;  %v1595_v44 = vcombine.high %v313_v38, %v317_v39 }
  0xa9   : > { %v1597_v45 = vcombine.high %v314_v40, %v318_v41  ;;  %v1596_v51 = vcombine.low %v314_v40, %v318_v41 }
  0xab   : > { %1168 = vmatpush1.bf16.msra.mxu0 %v1530_v47  ;;  %1221 = vmatpush1.bf16.msra.mxu1 %v1532_v48  ;;  %v309_v47 = vld [vmem:[#allocation5 + $0x2b0] sm:$0xff]  ;;  %v306_v48 = vld [vmem:[#allocation5 + $0x298] sm:$0xff] }
  0xac   : > { %1169 = vmatprep.subr.bf16.mxu0 %v1523_v49  ;;  %1222 = vmatprep.subr.bf16.mxu1 %v1525_v50  ;;  %v310_v49 = vld [vmem:[#allocation5 + $0x2b8] sm:$0xff]  ;;  %v1594_v50 = vcombine.low %v313_v38, %v317_v39  ;;  %v1587_v52 = vcombine.high %v305_v46, %v309_v47 }
  0xad   : > { %v1589_v53 = vcombine.high %v306_v48, %v310_v49  ;;  %v1588_v59 = vcombine.low %v306_v48, %v310_v49 }
  0xaf   : > { %1170 = vmatpush1.bf16.msra.mxu0 %v1522_v55  ;;  %1223 = vmatpush1.bf16.msra.mxu1 %v1524_v57  ;;  %v301_v55 = vld [vmem:[#allocation5 + $0x270] sm:$0xff]  ;;  %v298_v57 = vld [vmem:[#allocation5 + $0x258] sm:$0xff] }
  0xb0   : > { %1171 = vmatprep.subr.bf16.mxu0 %v1515_v58  ;;  %1224 = vmatprep.subr.bf16.mxu1 %v1517_v56  ;;  %v302_v58 = vld [vmem:[#allocation5 + $0x278] sm:$0xff]  ;;  %v1586_v56 = vcombine.low %v305_v46, %v309_v47  ;;  %v1579_v60 = vcombine.high %v297_v54, %v301_v55 }
  0xb1   : > { %v1581_v61 = vcombine.high %v298_v57, %v302_v58  ;;  %v1580_v3 = vcombine.low %v298_v57, %v302_v58 }
  0xb3   : > { %1172 = vmatpush1.bf16.msra.mxu0 %v1514_v63  ;;  %1225 = vmatpush1.bf16.msra.mxu1 %v1516_v0  ;;  %v293_v63 = vld [vmem:[#allocation5 + $0x230] sm:$0xff]  ;;  %v290_v0 = vld [vmem:[#allocation5 + $0x218] sm:$0xff] }
  0xb4   : > { %1173 = vmatprep.subr.bf16.mxu0 %v1507_v1  ;;  %1226 = vmatprep.subr.bf16.mxu1 %v1509_v2  ;;  %v294_v1 = vld [vmem:[#allocation5 + $0x238] sm:$0xff]  ;;  %v1578_v2 = vcombine.low %v297_v54, %v301_v55  ;;  %v1571_v4 = vcombine.high %v289_v62, %v293_v63  ;;  %v1570_v6 = vcombine.low %v289_v62, %v293_v63 }
  0xb5   : > { %v1573_v5 = vcombine.high %v290_v0, %v294_v1 }
  0xb7   : > { %1174 = vmatpush1.bf16.msra.mxu0 %v1506_v7  ;;  %1227 = vmatpush1.bf16.msra.mxu1 %v1508_v8  ;;  %v1572_v7 = vcombine.low %v290_v0, %v294_v1  ;;  %v353_v8 = vlaneseq }
  0xb8   : > { %1175 = vmatprep.subr.bf16.mxu0 %v1627_v9  ;;  %1228 = vmatprep.subr.bf16.mxu1 %v1629_v11 }
  0xb9   : > { %v2100_v9 = vshrl.u32 %v353_v8, 7 }
  0xbb   : > { %1176 = vmatpush2.bf16.msra.mxu0 %v1626_v16  ;;  %1229 = vmatpush2.bf16.msra.mxu1 %v1628_v17  ;;  %v355_v11 = vsub.s32 0, %v2100_v9  ;;  %v363_v13 = vsub.s32 2, %v2100_v9  ;;  %v367_v14 = vsub.s32 3, %v2100_v9  ;;  %v383_v62 = vsub.s32 7, %v2100_v9 }
  0xbc   : > { %1177 = vmatprep.subr.bf16.mxu0 %v1619_v18  ;;  %1230 = vmatprep.subr.bf16.mxu1 %v1621_v20 }
  0xbd   : > { %v364_v15 = vrot.slane %v2103_v12, %v363_v13  ;;  %v368_v17 = vrot.slane %v2103_v12, %v367_v14 }
  0xbf   : > { %1178 = vmatpush2.bf16.msra.mxu0 %v1618_v25  ;;  %1231 = vmatpush2.bf16.msra.mxu1 %v1620_v26 }
  0xc0   : > { %1179 = vmatprep.subr.bf16.mxu0 %v1611_v27  ;;  %1232 = vmatprep.subr.bf16.mxu1 %v1613_v28 }
  0xc3   : > { %1180 = vmatpush2.bf16.msra.mxu0 %v1610_v34  ;;  %1233 = vmatpush2.bf16.msra.mxu1 %v1612_v35 }
  0xc4   : > { %1181 = vmatprep.subr.bf16.mxu0 %v1603_v36  ;;  %1234 = vmatprep.subr.bf16.mxu1 %v1605_v37 }
  0xc7   : > { %1182 = vmatpush2.bf16.msra.mxu0 %v1602_v42  ;;  %1235 = vmatpush2.bf16.msra.mxu1 %v1604_v43 }
  0xc8   : > { %1183 = vmatprep.subr.bf16.mxu0 %v1595_v44  ;;  %1236 = vmatprep.subr.bf16.mxu1 %v1597_v45 }
  0xcb   : > { %1184 = vmatpush2.bf16.msra.mxu0 %v1594_v50  ;;  %1237 = vmatpush2.bf16.msra.mxu1 %v1596_v51 }
  0xcc   : > { %1185 = vmatprep.subr.bf16.mxu0 %v1587_v52  ;;  %1238 = vmatprep.subr.bf16.mxu1 %v1589_v53 }
  0xcf   : > { %1186 = vmatpush2.bf16.msra.mxu0 %v1586_v56  ;;  %1239 = vmatpush2.bf16.msra.mxu1 %v1588_v59  ;;  %v371_v59 = vsub.s32 4, %v2100_v9 }
  0xd0   : > { %1187 = vmatprep.subr.bf16.mxu0 %v1579_v60  ;;  %1240 = vmatprep.subr.bf16.mxu1 %v1581_v61  ;;  %v375_v60 = vsub.s32 5, %v2100_v9  ;;  %v379_v61 = vsub.s32 6, %v2100_v9 }
  0xd1   : > { %v372_v63 = vrot.slane %v2103_v12, %v371_v59 }
  0xd2   : > { %v376_v0 = vrot.slane %v2103_v12, %v375_v60 }
  0xd3   : > { %1188 = vmatpush2.bf16.msra.mxu0 %v1578_v2  ;;  %1241 = vmatpush2.bf16.msra.mxu1 %v1580_v3  ;;  %v380_v2 = vrot.slane %v2103_v12, %v379_v61  ;;  %v384_v3 = vrot.slane %v2103_v12, %v383_v62 }
  0xd4   : > { %1189 = vmatprep.subr.bf16.mxu0 %v1571_v4  ;;  %1242 = vmatprep.subr.bf16.mxu1 %v1573_v5 }
  0xd7   : > { %1190 = vmatpush2.bf16.msra.mxu0 %v1570_v6  ;;  %1243 = vmatpush2.bf16.msra.mxu1 %v1572_v7 }
  0xda   : > { %1192 = vmatmul.mubr.bf16.vlgmr.msra.gmra.mxu0 %v2078_v10  ;;  %1245 = vmatmul.mubr.bf16.vlgmr.msra.gmra.mxu1 %v2078_v10  ;;  %v359_v10 = vsub.s32 1, %v2100_v9 }
  0xdb   : > { %1201 = vmatprep.mubr.bf16.mxu0 %v2081_v19  ;;  %1254 = vmatprep.mubr.bf16.mxu1 %v2081_v19  ;;  %v356_v19 = vrot.slane %v2103_v12, %v355_v11 }
  0xdc   : > { %v360_v16 = vrot.slane %v2103_v12, %v359_v10 }
  0xe2   : > { %1202 = vmatmul.mubr.bf16.gmra.mxu0 %v2088_v30  ;;  %1255 = vmatmul.mubr.bf16.gmra.mxu1 %v2088_v30 }
 0x15a   : > { %v1087_v30 = vpop.f32.mrf.mxu0  ;;  %v1140_v20 = vpop.f32.mrf.mxu1 }
 0x15b   : > { %v1088_v18 = vadd.f32 %v1087_v30, %v356_v19  ;;  %v1141_v21 = vadd.f32 %v1140_v20, %v364_v15 }
 0x15c   : > { %v1089_v22 = vpop.f32.mrf.mxu0  ;;  %v1142_v24 = vpop.f32.mrf.mxu1 }
 0x15d   : > { %v1090_v23 = vadd.f32 %v1089_v22, %v360_v16  ;;  %v1143_v25 = vadd.f32 %v1142_v24, %v368_v17 }
 0x15e   : > { %v1091_v26 = vpop.f32.mrf.mxu0  ;;  %v1144_v28 = vpop.f32.mrf.mxu1 }
 0x15f   : > { %v1654_v27 = vpack.c.bf16 %v1090_v23, %v1088_v18  ;;  %v1655_v29 = vpack.c.bf16 %v1143_v25, %v1141_v21  ;;  %v1092_v32 = vadd.f32 %v1091_v26, %v356_v19  ;;  %v1145_v35 = vadd.f32 %v1144_v28, %v364_v15 }
 0x160   : > { %v1093_v31 = vpop.f32.mrf.mxu0  ;;  %v1146_v34 = vpop.f32.mrf.mxu1 }
 0x161   : > { %1361 = vst [vmem:[%s2113_s20] sm:$0xff] %v1654_v27  ;;  %v1094_v33 = vadd.f32 %v1093_v31, %v360_v16  ;;  %1362 = vst [vmem:[%s2113_s20 + $0x8] sm:$0xff] %v1655_v29  ;;  %v1147_v36 = vadd.f32 %v1146_v34, %v368_v17 }
 0x162   : > { %v1097_v37 = vpop.f32.mrf.mxu0  ;;  %v1150_v40 = vpop.f32.mrf.mxu1 }
 0x163   : > { %v1658_v38 = vpack.c.bf16 %v1094_v33, %v1092_v32  ;;  %v1098_v39 = vadd.f32 %v1097_v37, %v356_v19  ;;  %v1659_v41 = vpack.c.bf16 %v1147_v36, %v1145_v35  ;;  %v1151_v42 = vadd.f32 %v1150_v40, %v364_v15 }
 0x164   : > { %v1099_v43 = vpop.f32.mrf.mxu0  ;;  %v1152_v45 = vpop.f32.mrf.mxu1 }
 0x165   : > { %1365 = vst [vmem:[%s2113_s20 + $0x20] sm:$0xff] %v1658_v38  ;;  %v1100_v44 = vadd.f32 %v1099_v43, %v360_v16  ;;  %1366 = vst [vmem:[%s2113_s20 + $0x28] sm:$0xff] %v1659_v41  ;;  %v1153_v46 = vadd.f32 %v1152_v45, %v368_v17 }
 0x166   : > { %v1101_v47 = vpop.f32.mrf.mxu0  ;;  %v1154_v50 = vpop.f32.mrf.mxu1 }
 0x167   : > { %v1662_v48 = vpack.c.bf16 %v1100_v44, %v1098_v39  ;;  %v1102_v49 = vadd.f32 %v1101_v47, %v356_v19  ;;  %v1663_v51 = vpack.c.bf16 %v1153_v46, %v1151_v42  ;;  %v1155_v52 = vadd.f32 %v1154_v50, %v364_v15 }
 0x168   : > { %v1103_v53 = vpop.f32.mrf.mxu0  ;;  %v1156_v55 = vpop.f32.mrf.mxu1 }
 0x169   : > { %1369 = vst [vmem:[%s2113_s20 + $0x40] sm:$0xff] %v1662_v48  ;;  %v1104_v54 = vadd.f32 %v1103_v53, %v360_v16  ;;  %1370 = vst [vmem:[%s2113_s20 + $0x48] sm:$0xff] %v1663_v51  ;;  %v1157_v57 = vadd.f32 %v1156_v55, %v368_v17 }
 0x16b   : > { %v1666_v58 = vpack.c.bf16 %v1104_v54, %v1102_v49  ;;  %v1667_v56 = vpack.c.bf16 %v1157_v57, %v1155_v52 }
 0x16d   : > { %1373 = vst [vmem:[%s2113_s20 + $0x60] sm:$0xff] %v1666_v58  ;;  %1374 = vst [vmem:[%s2113_s20 + $0x68] sm:$0xff] %v1667_v56 }
 0x19a   : > { %v1193_v1 = vpop.f32.mrf.mxu0  ;;  %v1246_v4 = vpop.f32.mrf.mxu1 }
 0x19b   : > { %v1194_v6 = vadd.f32 %v1193_v1, %v372_v63  ;;  %v1247_v11 = vadd.f32 %v1246_v4, %v380_v2 }
 0x19c   : > { %v1195_v5 = vpop.f32.mrf.mxu0  ;;  %v1248_v8 = vpop.f32.mrf.mxu1 }
 0x19d   : > { %v1196_v7 = vadd.f32 %v1195_v5, %v376_v0  ;;  %v1249_v13 = vadd.f32 %v1248_v8, %v384_v3 }
 0x19e   : > { %v1197_v10 = vpop.f32.mrf.mxu0  ;;  %v1250_v14 = vpop.f32.mrf.mxu1 }
 0x19f   : > { %v1656_v9 = vpack.c.bf16 %v1196_v7, %v1194_v6  ;;  %v1657_v19 = vpack.c.bf16 %v1249_v13, %v1247_v11  ;;  %v1198_v16 = vadd.f32 %v1197_v10, %v372_v63  ;;  %v1251_v12 = vadd.f32 %v1250_v14, %v380_v2 }
 0x1a0   : > { %v1199_v15 = vpop.f32.mrf.mxu0  ;;  %v1252_v17 = vpop.f32.mrf.mxu1 }
 0x1a1   : > { %1363 = vst [vmem:[%s2113_s20 + $0x10] sm:$0xff] %v1656_v9  ;;  %v1200_v30 = vadd.f32 %v1199_v15, %v376_v0  ;;  %1364 = vst [vmem:[%s2113_s20 + $0x18] sm:$0xff] %v1657_v19  ;;  %v1253_v18 = vadd.f32 %v1252_v17, %v384_v3 }
 0x1a2   : > { %v1203_v20 = vpop.f32.mrf.mxu0  ;;  %v1256_v22 = vpop.f32.mrf.mxu1 }
 0x1a3   : > { %v1660_v21 = vpack.c.bf16 %v1200_v30, %v1198_v16  ;;  %v1661_v23 = vpack.c.bf16 %v1253_v18, %v1251_v12  ;;  %v1204_v25 = vadd.f32 %v1203_v20, %v372_v63  ;;  %v1257_v28 = vadd.f32 %v1256_v22, %v380_v2 }
 0x1a4   : > { %v1205_v24 = vpop.f32.mrf.mxu0  ;;  %v1258_v27 = vpop.f32.mrf.mxu1 }
 0x1a5   : > { %1367 = vst [vmem:[%s2113_s20 + $0x30] sm:$0xff] %v1660_v21  ;;  %v1206_v26 = vadd.f32 %v1205_v24, %v376_v0  ;;  %1368 = vst [vmem:[%s2113_s20 + $0x38] sm:$0xff] %v1661_v23  ;;  %v1259_v29 = vadd.f32 %v1258_v27, %v384_v3 }
 0x1a6   : > { %v1207_v31 = vpop.f32.mrf.mxu0  ;;  %v1260_v33 = vpop.f32.mrf.mxu1 }
 0x1a7   : > { %v1664_v32 = vpack.c.bf16 %v1206_v26, %v1204_v25  ;;  %v1665_v34 = vpack.c.bf16 %v1259_v29, %v1257_v28  ;;  %v1208_v36 = vadd.f32 %v1207_v31, %v372_v63  ;;  %v1261_v39 = vadd.f32 %v1260_v33, %v380_v2 }
 0x1a8   : > { %v1209_v35 = vpop.f32.mrf.mxu0  ;;  %v1262_v38 = vpop.f32.mrf.mxu1 }
 0x1a9   : > { %1371 = vst [vmem:[%s2113_s20 + $0x50] sm:$0xff] %v1664_v32  ;;  %v1210_v37 = vadd.f32 %v1209_v35, %v376_v0  ;;  %1372 = vst [vmem:[%s2113_s20 + $0x58] sm:$0xff] %v1665_v34  ;;  %v1263_v40 = vadd.f32 %v1262_v38, %v384_v3 }
 0x1ab   : > { %v1668_v41 = vpack.c.bf16 %v1210_v37, %v1208_v36  ;;  %v1669_v42 = vpack.c.bf16 %v1263_v40, %v1261_v39 }
 0x1ad   : > { %1375 = vst [vmem:[%s2113_s20 + $0x70] sm:$0xff] %v1668_v41  ;;  %1376 = vst [vmem:[%s2113_s20 + $0x78] sm:$0xff] %v1669_v42 }
 0x1ae   : > { %1844 = shalt.err (!%p1841_p9)
}
 0x1af   : > { %s1845_s23 = scalar_lea.hbm %s2142_s8, 2048  ;;  %s1849_s4 = scalar_lea.hbm %s2192_s3, 4096 }
 0x1b0   : > { %p1846_p13 = scmp.ne.s32.totalorder %s2142_s8, %s1845_s23  ;;  %p1850_p4 = scmp.lt.s32.totalorder %s2142_s8, %s2192_s3 }
 0x1b1   : > { %p1851_p8 = scmp.lt.s32.totalorder %s1849_s4, %s1845_s23 }
 0x1b2   : > { %p1847_p5 = pnand %p1846_p13, %p2208_p10 }
 0x1b3   : > { %p1852_p3 = por %p1851_p8, %p1850_p4 }
 0x1b4   : > { %p1848_p0 = pneg %p1847_p5 }
 0x1b6   : > { %p1853_p11 = pnand %p1852_p3, %p1848_p0 }
 0x1b8   : > { %1856 = shalt.err (!%p1853_p11)
}
 0x1b9   : > { %s1909_s18 = smov 512   ;;  %s1910_s20 = smov 32  }
 0x1ba   : > { %1682 = dma.vmem_to_hbm [thread:$0]  (%p2208_p10), %s2144_s27, 2048, %s2142_s8, %s1378_s16, %s1909_s18, %s1909_s18, %s1910_s20  }
 0x1bb PF: > { %s1407_s25 = sand.u32 1, %s1887_s12   ;;  %p2209_p1 = scmp.ne.s32.totalorder %s2198_s19, 0 }
 0x1bc   : > { %p2210_p2 = scmp.ge.s32.totalorder %s1899_s15, 2  ;;  %s1408_s28 = scalar_lea.sflag [#allocation4], %s1407_s25 }
 0x1be   : > { %p1696_p6 = pnand %p2210_p2, %p2209_p1 }
 0x1c0   : > { %p1697_p12 = pneg %p1696_p6 }
 0x1c2   : > { %1882 = dma.done.wait (%p1697_p12), %s1408_s28, 2048  }
 0x1c3   : > { %1884 = vsyncadd (%p1697_p12), %s1408_s28, 4294965248  ;;  %p17_p7 = scmp.ge.s32.totalorder %s2003_s7, 4   ;;  %s2211_s12 = smov %s1891_s13 }
 0x1c4   : > { %s2212_s13 = smov %s1895_s14  ;;  %s2213_s14 = smov %s2019_s11 }
 0x1c5   : > { %s2214_s15 = smov %s2003_s7  ;;  %19 = sbr.rel (!%p17_p7) target bundleno = 6 (0x6), region = 85 }
 0x1ca   :  { %1413 = vsyncpa [#allocation3], 1 }
 0x1cb   :  { %1415 = vsyncpa [#allocation3 + $0x1], 1 }
 0x1cc   :  { %1416 = vsyncpa [#allocation6], 1 }
 0x1cd   :  { %1417 = vsyncpa [#allocation4], 1 }
 0x1ce   :  { %1419 = vsyncpa [#allocation4 + $0x1], 1 }

</bundles_post_ra>
